<compile_context>
chip_gen: v7x
topology: tpu7x:2x2x1
jax: 0.10.0
libtpu: 0.0.40
codegen_flags: <defaults>
</compile_context>

<pallas_src>
import functools

import jax
import jax.numpy as jnp
from jax.experimental import pallas as pl
from jax.experimental.pallas import tpu as pltpu


def _cosface_kernel(cos_ref, lab_ref, out_ref, *, s, m, tc):
    # cos_ref: (tb, tc) tile of cosine logits (any float dtype)
    # lab_ref: (tb, 1)  int32 labels for these rows (-1 = no margin)
    j = pl.program_id(1)                                   # class-tile index
    cos = cos_ref[...].astype(jnp.float32)
    lab = lab_ref[...]                                     # (tb, 1) int32
    # Global column id of every lane element in this tile.
    col = jax.lax.broadcasted_iota(jnp.int32, cos.shape, 1) + j * tc
    # Rows with label == -1 never match (col >= 0), so no explicit valid check.
    hit = col == lab
    out = cos * jnp.float32(s) - jnp.where(hit, jnp.float32(s * m),
                                           jnp.float32(0.0))
    out_ref[...] = out.astype(out_ref.dtype)


def _round_up(x, m):
    return -(-x // m) * m


def _tile_byte_budget():
    """Per-tile byte budget: 4 MiB suits v5e/v6e; 8 MiB amortizes the per-step
    overhead better on v7x's 3.2 TB/s HBM (detected via its 64 MiB VMEM/TC)."""
    budget = 4 << 20
    try:
        info = pltpu.get_tpu_info()
        vmem = int(getattr(info, "vmem_capacity_bytes", 0) or 0)
        if 0 < vmem <= (64 << 20):          # v7x-class chip
            budget = 8 << 20
    except Exception:
        pass
    return budget


def _pick_tiles(B, C, itemsize, tile_bytes):
    elems = max(tile_bytes // itemsize, 8 * 128)
    # Class (lane) tile: as wide as possible for unmasked lane-dense stores.
    # Full-extent blocks are always legal, so small / unaligned C is fine.
    tc = C if C <= 4096 else 4096
    # Row (sublane) tile from the remaining byte budget (multiple of 8).
    tb_budget = max(8, (elems // max(tc, 1)) // 8 * 8)
    tb = B if B <= tb_budget else tb_budget
    return tb, tc


def cosface(cosine, label, *, s=64.0, m=0.4, tb=None, tc=None):
    B, C = cosine.shape
    itemsize = cosine.dtype.itemsize
    tile_bytes = _tile_byte_budget()
    auto_tb, auto_tc = _pick_tiles(B, C, itemsize, tile_bytes)
    if tb is None:
        tb = auto_tb
    if tc is None:
        tc = auto_tc

    # Megacore / v7x guard: a non-trivial matrix should yield at least a few
    # grid blocks along a parallel axis so both TensorCores get work.
    if B * C * itemsize >= (512 << 10):
        while (pl.cdiv(B, tb) * pl.cdiv(C, tc)) < 4 and tb > 8:
            new_tb = max(8, _round_up(tb // 2, 8))
            if new_tb == tb:
                break
            tb = new_tb

    # Block dims must be (8,128)-aligned or equal to the full array dim.
    assert tb == B or tb % 8 == 0, tb
    assert tc == C or tc % 128 == 0, tc

    grid = (pl.cdiv(B, tb), pl.cdiv(C, tc))
    label2d = label.astype(jnp.int32).reshape(B, 1)
    kernel = functools.partial(_cosface_kernel, s=float(s), m=float(m), tc=tc)

    cost = pl.CostEstimate(
        flops=2 * B * C,
        transcendentals=0,
        bytes_accessed=B * C * 2 * itemsize + B * 4,
    )
    # Double-buffered in + out tiles plus the tiny label block, with headroom.
    vmem_limit = int(min(48 << 20, max(16 << 20, 4 * tb * tc * itemsize + (4 << 20))))

    return pl.pallas_call(
        kernel,
        out_shape=jax.ShapeDtypeStruct((B, C), cosine.dtype),
        grid=grid,
        in_specs=[
            # Large lane-dense cosine tile.
            pl.BlockSpec((tb, tc), lambda i, j: (i, j)),
            # Labels: block index constant in j -> DMA'd once per row-tile only.
            pl.BlockSpec((tb, 1), lambda i, j: (i, 0)),
        ],
        out_specs=pl.BlockSpec((tb, tc), lambda i, j: (i, j)),
        compiler_params=pltpu.CompilerParams(
            dimension_semantics=("parallel", "parallel"),
            vmem_limit_bytes=vmem_limit,
        ),
        cost_estimate=cost,
        # TODO(synk): callers that can donate `cosine` (same dtype as the
        # output) may add input_output_aliases={0: 0} to halve HBM footprint.
    )(cosine, label2d)


def cosface_reference(cosine, label, *, s=64.0, m=0.4):
    B, C = cosine.shape
    cos = cosine.astype(jnp.float32)
    valid = (label != -1)[:, None]
    one_hot = jax.nn.one_hot(jnp.clip(label, 0, C - 1), C, dtype=jnp.float32)
    margin = jnp.where(valid, one_hot * m, 0.0)
    return (cos - margin) * s


if __name__ == "__main__":
    key = jax.random.PRNGKey(0)
    k1, k2, k3, k4, k5, k6 = jax.random.split(key, 6)

    # --- small f32 test (auto tiling) ---
    B, C = 16, 256
    cosine = jnp.tanh(jax.random.normal(k1, (B, C), dtype=jnp.float32))
    label = jax.random.randint(k2, (B,), 0, C, dtype=jnp.int32)
    label = label.at[3].set(-1).at[10].set(-1)

    out = jax.block_until_ready(cosface(cosine, label, s=64.0, m=0.4))
    ref = cosface_reference(cosine, label, s=64.0, m=0.4)
    assert out.shape == (B, C) and out.dtype == jnp.float32
    assert jnp.allclose(out, ref, atol=1e-5, rtol=1e-5)

    # --- small bf16 test (checks the cast-on-store path) ---
    B2, C2 = 32, 384
    cos_bf16 = jnp.tanh(jax.random.normal(k3, (B2, C2), dtype=jnp.float32)
                        ).astype(jnp.bfloat16)
    label2 = jax.random.randint(k4, (B2,), 0, C2, dtype=jnp.int32)
    label2 = label2.at[0].set(-1).at[17].set(-1)

    out2 = jax.block_until_ready(cosface(cos_bf16, label2, s=64.0, m=0.4))
    ref2 = cosface_reference(cos_bf16, label2, s=64.0, m=0.4)
    assert out2.shape == (B2, C2) and out2.dtype == jnp.bfloat16
    assert jnp.allclose(out2.astype(jnp.float32), ref2, atol=0.5, rtol=1e-2)

    # --- non-divisible shape with explicit small tiles: exercises the cdiv
    #     grid and masked boundary blocks on both axes ---
    B3, C3 = 20, 300
    cos3 = jnp.tanh(jax.random.normal(k5, (B3, C3), dtype=jnp.float32))
    label3 = jax.random.randint(k6, (B3,), 0, C3, dtype=jnp.int32)
    label3 = label3.at[5].set(-1)

    out3 = jax.block_until_ready(cosface(cos3, label3, tb=8, tc=128))
    ref3 = cosface_reference(cos3, label3)
    assert out3.shape == (B3, C3) and out3.dtype == jnp.float32
    assert jnp.allclose(out3, ref3, atol=1e-5, rtol=1e-5)

    print("KERNEL_OK")
</pallas_src>

<mosaic_0001>
module attributes {stable_mosaic.version = 11 : i64} {
  func.func @_cosface_kernel(%arg0: i32, %arg1: i32, %arg2: memref<16x256xf32, #tpu.memory_space<vmem>>, %arg3: memref<16x1xi32, #tpu.memory_space<vmem>>, %arg4: memref<16x256xf32, #tpu.memory_space<vmem>>) attributes {dimension_semantics = [#tpu.dimension_semantics<parallel>, #tpu.dimension_semantics<parallel>], iteration_bounds = array<i64: 1, 1>, scalar_prefetch = 0 : i64, scratch_operands = 0 : i64, tpu.core_type = #tpu.core_type<tc>, window_params = [{transform_indices = @transform_0, window_bounds = array<i64: 16, 256>}, {transform_indices = @transform_1, window_bounds = array<i64: 16, 1>}, {transform_indices = @transform_2, window_bounds = array<i64: 16, 256>}]} {
    %c0 = arith.constant 0 : index
    %c0_0 = arith.constant 0 : index
    %0 = vector.load %arg2[%c0, %c0_0] : memref<16x256xf32, #tpu.memory_space<vmem>>, vector<16x256xf32>
    %c0_1 = arith.constant 0 : index
    %c0_2 = arith.constant 0 : index
    %1 = vector.load %arg3[%c0_1, %c0_2] : memref<16x1xi32, #tpu.memory_space<vmem>>, vector<16x1xi32>
    %2 = tpu.iota {dimensions = array<i32: 1>} : vector<16x256xi32>
    %c256_i32 = arith.constant 256 : i32
    %3 = arith.muli %arg1, %c256_i32 : i32
    %4 = vector.broadcast %3 : i32 to vector<16x256xi32>
    %5 = arith.addi %2, %4 : vector<16x256xi32>
    %6 = vector.broadcast %1 : vector<16x1xi32> to vector<16x256xi32>
    %7 = arith.cmpi eq, %5, %6 : vector<16x256xi32>
    %cst = arith.constant 6.400000e+01 : f32
    %8 = vector.broadcast %cst : f32 to vector<16x256xf32>
    %9 = arith.mulf %0, %8 : vector<16x256xf32>
    %cst_3 = arith.constant 2.560000e+01 : f32
    %cst_4 = arith.constant 0.000000e+00 : f32
    %10 = vector.broadcast %cst_3 : f32 to vector<16x256xf32>
    %11 = vector.broadcast %cst_4 : f32 to vector<16x256xf32>
    %12 = arith.select %7, %10, %11 : vector<16x256xi1>, vector<16x256xf32>
    %13 = arith.subf %9, %12 : vector<16x256xf32>
    %c0_5 = arith.constant 0 : index
    %c0_6 = arith.constant 0 : index
    %14 = vector.load %arg4[%c0_5, %c0_6] : memref<16x256xf32, #tpu.memory_space<vmem>>, vector<16x256xf32>
    tpu.vector_store %arg4[%c0_5, %c0_6], %13 {strides = array<i32>} : memref<16x256xf32, #tpu.memory_space<vmem>>, vector<16x256xf32>,
    return
  }
  func.func @transform_0(%arg0: i32, %arg1: i32) -> (i32, i32) {
    %c0_i32 = arith.constant 0 : i32
    return %arg0, %arg1 : i32, i32
  }
  func.func @transform_1(%arg0: i32, %arg1: i32) -> (i32, i32) {
    %c0_i32 = arith.constant 0 : i32
    %c0_i32_0 = arith.constant 0 : i32
    return %arg0, %c0_i32 : i32, i32
  }
  func.func @transform_2(%arg0: i32, %arg1: i32) -> (i32, i32) {
    %c0_i32 = arith.constant 0 : i32
    return %arg0, %arg1 : i32, i32
  }
}

</mosaic_0001>

<bundles_post_ra>
// kernel: tpu_custom_call.1
= control target key start
LH: loop header
LB: loop body
LE: loop exit
PB: predicated region body
PF: predicated region fallthrough
CT: control target
= control target key end

     0   :  { %7 = vsyncpa [#allocation3], 0  ;;  %s194_s0 = inlined_call_operand.hbm [shape: f32[16,256], index: 0, kind: input, shape index: {}]   ;;  %s195_s1 = inlined_call_operand.vmem [shape: s32[16,1], index: 1, kind: input, shape index: {}]   ;;  %s196_s2 = inlined_call_operand.hbm [shape: f32[16,256], index: 2, kind: output, shape index: {}]  }
   0x1   :  { %8 = vsyncpa [#allocation4], 0  ;;  %s137_s9 = smov [#allocation2]   ;;  %s89_s13 = scalar_lea.hbm %s194_s0, 512 }
   0x2   :  { %s14_s10 = sshll.u32 %s137_s9, 4  ;;  %p90_p0 = scmp.ne.s32.totalorder %s194_s0, %s89_s13  ;;  %s15_s10 = int_to_ptr.vmem [resolvable:$true] %s14_s10 }
   0x3   :  { %p93_p1 = scmp.lt.u32.totalorder %s89_s13, %s194_s0 }
   0x5   :  { %p95_p2 = pnand %p93_p1, %p90_p0 }
   0x7   :  { %98 = shalt.err (!%p95_p2)
}
   0x8   :  { %s99_s18 = scalar_lea.vmem %s15_s10, 512  ;;  %p104_p4 = scmp.lt.s32.totalorder %s15_s10, %s15_s10 }
   0x9   :  { %p100_p3 = scmp.ne.s32.totalorder %s15_s10, %s99_s18  ;;  %p105_p5 = scmp.lt.s32.totalorder %s99_s18, %s99_s18 }
   0xb   :  { %p106_p6 = por %p105_p5, %p104_p4 }
   0xd   :  { %p107_p7 = pnand %p106_p6, %p100_p3 }
   0xf   :  { %110 = shalt.err (!%p107_p7)
}
  0x10   :  { %s138_s19 = smov 256   ;;  %s139_s20 = smov 16  }
  0x11   :  { %20 = dma.hbm_to_vmem [thread:$0]  %s194_s0, 512, %s15_s10, [#allocation3], %s138_s19, %s138_s19, %s139_s20  }
  0x12   :  { %133 = dma.done.wait [#allocation3], 512  }
  0x13   :  { %134 = vsyncadd [#allocation3], 4294966784  ;;  %v140_v0 = vmov 0   ;;  %v30_v1 = vld [vmem:[%s195_s1] sm:$0xff]  ;;  %v31_v2 = vld [vmem:[%s195_s1 + $0x8] sm:$0xff]  ;;  %v32_v3 = vlaneseq  ;;  %v141_v13 = vmov 0.0  }
  0x14   :  { %88 = vset.pattern.permute.xlu0 %v140_v0  ;;  %v26_v5 = vld [vmem:[#allocation2] sm:$0xff]  ;;  %v27_v6 = vld [vmem:[#allocation2 + $0x8] sm:$0xff]  ;;  %v28_v11 = vld [vmem:[#allocation2 + $0x10] sm:$0xff]  ;;  %s142_s0 = smov [#allocation5]  }
  0x15   :  { %40 = vperm.xlu0 %88, %v30_v1   ;;  %v33_v4 = vand.u32 127, %v32_v3  ;;  %v49_v8 = vmul.f32 64.0, %v26_v5  ;;  %v50_v9 = vmul.f32 64.0, %v27_v6  ;;  %v29_v12 = vld [vmem:[#allocation2 + $0x18] sm:$0xff]  ;;  %v51_v18 = vmul.f32 64.0, %v28_v11  ;;  %s70_s1 = sshll.u32 %s142_s0, 4  ;;  %s71_s1 = int_to_ptr.vmem [resolvable:$true] %s70_s1 }
  0x16   :  { %v52_v19 = vmul.f32 64.0, %v29_v12  ;;  %s111_s27 = scalar_lea.vmem %s71_s1, 512  ;;  %p116_p9 = scmp.lt.s32.totalorder %s71_s1, %s71_s1 }
  0x17   :  { %v34_v7 = vadd.s32 128, %v33_v4  ;;  %p112_p8 = scmp.ne.s32.totalorder %s71_s1, %s111_s27  ;;  %p117_p10 = scmp.lt.s32.totalorder %s111_s27, %s111_s27 }
  0x19   :  { %43 = vperm.xlu0 %88, %v31_v2   ;;  %p118_p11 = por %p117_p10, %p116_p9 }
  0x1b   :  { %p119_p12 = pnand %p118_p11, %p112_p8 }
  0x94   :  { %v41_v10 = vpop.permute.xlu0 %40 }
  0x95   :  { %vm45_vm0 = vcmp.eq.s32.totalorder %v33_v4, %v41_v10  ;;  %vm46_vm1 = vcmp.eq.s32.totalorder %v34_v7, %v41_v10 }
  0x96   :  { %v53_v14 = vsel %vm45_vm0, 25.6, %v141_v13  ;;  %v54_v15 = vsel %vm46_vm1, 25.6, %v141_v13 }
  0x97   :  { %v57_v16 = vsub.f32 %v49_v8, %v53_v14  ;;  %v58_v17 = vsub.f32 %v50_v9, %v54_v15 }
  0x98   :  { %v44_v20 = vpop.permute.xlu0 %43 }
  0x99   :  { %61 = vst [vmem:[#allocation5] sm:$0xff] %v57_v16  ;;  %62 = vst [vmem:[#allocation5 + $0x8] sm:$0xff] %v58_v17  ;;  %vm47_vm2 = vcmp.eq.s32.totalorder %v33_v4, %v44_v20  ;;  %vm48_vm3 = vcmp.eq.s32.totalorder %v34_v7, %v44_v20 }
  0x9a   :  { %v55_v21 = vsel %vm47_vm2, 25.6, %v141_v13  ;;  %v56_v22 = vsel %vm48_vm3, 25.6, %v141_v13 }
  0x9b   :  { %v59_v23 = vsub.f32 %v51_v18, %v55_v21  ;;  %v60_v24 = vsub.f32 %v52_v19, %v56_v22 }
  0x9d   :  { %63 = vst [vmem:[#allocation5 + $0x10] sm:$0xff] %v59_v23  ;;  %64 = vst [vmem:[#allocation5 + $0x18] sm:$0xff] %v60_v24 }
  0x9e   :  { %122 = shalt.err (!%p119_p12)
}
  0x9f   :  { %s123_s30 = scalar_lea.hbm %s196_s2, 512 }
  0xa0   :  { %p124_p13 = scmp.ne.s32.totalorder %s196_s2, %s123_s30  ;;  %p127_p0 = scmp.lt.u32.totalorder %s123_s30, %s196_s2 }
  0xa2   :  { %p129_p1 = pnand %p127_p0, %p124_p13 }
  0xa4   :  { %132 = shalt.err (!%p129_p1)
}
  0xa5   :  { %76 = dma.vmem_to_hbm [thread:$0]  %s71_s1, 512, %s196_s2, [#allocation4], %s138_s19, %s138_s19, %s139_s20  }
  0xa6   :  { %135 = dma.done.wait [#allocation4], 512  }
  0xa7   :  { %136 = vsyncadd [#allocation4], 4294966784 }
  0xa8   :  { %80 = vsyncpa [#allocation3], 1 }
  0xa9   :  { %81 = vsyncpa [#allocation4], 1 }

</bundles_post_ra>
